<compile_context>
chip_gen: v6e
topology: v6e:2x2x1
jax: 0.10.0
libtpu: 0.0.40
codegen_flags: <defaults>
</compile_context>

<pallas_src>
import functools

import jax
import jax.numpy as jnp
from jax.experimental import pallas as pl
from jax.experimental.pallas import tpu as pltpu

LANES = 128
SUBLANES = 8
MAX_ROW_TILE = 2048   # (2048, 128) f32 = 1 MiB per input block
NCORES = 2            # parallel axis for megacore (v7x); no-op on 1-TC chips


def _jaccard_partial_kernel(x_ref, t_ref, out_ref, *, n, row_tile):
    """Accumulate per-lane partial sums into the resident (24, 128) out block.

    out rows  0: 8  -> partial sum of sigmoid(x) * t   (intersection)
    out rows  8:16  -> partial sum of sigmoid(x)
    out rows 16:24  -> partial sum of t
    """
    s_idx = pl.program_id(1)

    @pl.when(s_idx == 0)
    def _():
        out_ref[...] = jnp.zeros_like(out_ref)

    # Global block index this grid point is responsible for. The in_specs
    # index_map clamps the actual DMA to the last real block; the iota mask
    # below zeroes out duplicated / out-of-range / padded elements.
    blk = pl.program_id(0) * pl.num_programs(1) + s_idx

    x = x_ref[...].astype(jnp.float32)   # cast in-kernel; inputs stream in native dtype
    t = t_ref[...].astype(jnp.float32)

    # sigmoid with a single EUP op (tanh) instead of exp + reciprocal.
    p = 0.5 * jnp.tanh(0.5 * x) + 0.5

    # Tail mask from the global flat element index (covers pad, partial last
    # block and clamped duplicate blocks). Cheap VPU work; kernel is mem-bound.
    r = jax.lax.broadcasted_iota(jnp.int32, x.shape, 0)
    c = jax.lax.broadcasted_iota(jnp.int32, x.shape, 1)
    gidx = (blk * row_tile + r) * LANES + c
    valid = gidx < n
    p = jnp.where(valid, p, 0.0)
    t = jnp.where(valid, t, 0.0)

    def fold(v):
        # (row_tile, 128) -> (8, 128); sublane-aligned split, VPU vreg adds.
        return jnp.sum(v.reshape(row_tile // SUBLANES, SUBLANES, LANES), axis=0)

    out_ref[0:SUBLANES, :] += fold(p * t)
    out_ref[SUBLANES:2 * SUBLANES, :] += fold(p)
    out_ref[2 * SUBLANES:3 * SUBLANES, :] += fold(t)


def jaccard_loss(y_pred, y_true, smooth=1e-10):
    assert y_pred.shape == y_true.shape
    n = y_pred.size

    x = y_pred.reshape(-1)
    t = y_true.reshape(-1)

    # Minimal pad so the flat length is a multiple of one (8, 128) vreg tile.
    chunk = SUBLANES * LANES
    pad = (-n) % chunk
    if pad:
        x = jnp.pad(x, (0, pad))
        t = jnp.pad(t, (0, pad))
    rows = (n + pad) // LANES

    x2 = x.reshape(rows, LANES)
    t2 = t.reshape(rows, LANES)

    row_tile = min(MAX_ROW_TILE, rows)      # rows is a multiple of 8, so row_tile is too
    nblocks = pl.cdiv(rows, row_tile)
    steps = pl.cdiv(nblocks, NCORES)

    def in_map(p_idx, s_idx):
        # Clamp so no grid point DMAs past the last real block; the duplicated
        # / out-of-range work is zeroed by the in-kernel mask.
        return (jnp.minimum(p_idx * steps + s_idx, nblocks - 1), 0)

    in_spec = pl.BlockSpec((row_tile, LANES), in_map)

    kernel = functools.partial(_jaccard_partial_kernel, n=n, row_tile=row_tile)

    partials = pl.pallas_call(
        kernel,
        out_shape=jax.ShapeDtypeStruct((NCORES, 3 * SUBLANES, LANES), jnp.float32),
        grid_spec=pltpu.PrefetchScalarGridSpec(
            num_scalar_prefetch=0,
            grid=(NCORES, steps),
            in_specs=[in_spec, in_spec],
            out_specs=pl.BlockSpec(
                (None, 3 * SUBLANES, LANES), lambda p_idx, s_idx: (p_idx, 0, 0)
            ),
        ),
        compiler_params=pltpu.CompilerParams(
            dimension_semantics=("parallel", "arbitrary"),
        ),
    )(x2, t2)

    # Tiny final reduction + scalar Jaccard formula in plain JAX.
    intersection = jnp.sum(partials[:, 0:SUBLANES, :])
    sum_p = jnp.sum(partials[:, SUBLANES:2 * SUBLANES, :])
    sum_t = jnp.sum(partials[:, 2 * SUBLANES:3 * SUBLANES, :])
    union = sum_p + sum_t - intersection
    jaccard_index = (intersection + smooth) / (union + smooth)
    return 1.0 - jaccard_index


def jaccard_loss_ref(y_pred, y_true, smooth=1e-10):
    p = jax.nn.sigmoid(y_pred.astype(jnp.float32)).reshape(-1)
    t = y_true.astype(jnp.float32).reshape(-1)
    intersection = jnp.sum(p * t)
    union = jnp.sum(p) + jnp.sum(t) - intersection
    return 1.0 - (intersection + smooth) / (union + smooth)


if __name__ == "__main__":
    key = jax.random.PRNGKey(0)
    k1, k2 = jax.random.split(key)
    B, C, H, W = 2, 4, 16, 16          # NCHW, like the PyTorch module's typical inputs
    y_pred = jax.random.normal(k1, (B, C, H, W), dtype=jnp.float32)
    y_true = (jax.random.uniform(k2, (B, C, H, W)) > 0.5).astype(jnp.float32)

    out = jaccard_loss(y_pred, y_true, smooth=1e-10)
    out = jax.block_until_ready(out)

    ref = jaccard_loss_ref(y_pred, y_true, smooth=1e-10)
    assert jnp.allclose(out, ref, rtol=1e-5, atol=1e-5), (out, ref)
    print("KERNEL_OK")
</pallas_src>

<mosaic_0001>
module attributes {stable_mosaic.version = 11 : i64} {
  func.func @_jaccard_partial_kernel(%arg0: i32, %arg1: i32, %arg2: memref<16x128xf32, #tpu.memory_space<vmem>>, %arg3: memref<16x128xf32, #tpu.memory_space<vmem>>, %arg4: memref<1x24x128xf32, #tpu.memory_space<vmem>>) attributes {dimension_semantics = [#tpu.dimension_semantics<parallel>, #tpu.dimension_semantics<arbitrary>], iteration_bounds = array<i64: 2, 1>, scalar_prefetch = 0 : i64, scratch_operands = 0 : i64, tpu.core_type = #tpu.core_type<tc>, window_params = [{transform_indices = @transform_0, window_bounds = array<i64: 16, 128>}, {transform_indices = @transform_1, window_bounds = array<i64: 16, 128>}, {transform_indices = @transform_2, window_bounds = array<i64: 1, 24, 128>}]} {
    %c0_i32 = arith.constant 0 : i32
    %0 = arith.cmpi eq, %arg1, %c0_i32 : i32
    %1 = arith.extui %0 : i1 to i32
    %c0_i32_0 = arith.constant 0 : i32
    %2 = arith.cmpi ne, %1, %c0_i32_0 : i32
    scf.if %2 {
      %cst_27 = arith.constant 0.000000e+00 : f32
      %53 = vector.broadcast %cst_27 : f32 to vector<24x128xf32>
      %c0_28 = arith.constant 0 : index
      %c0_29 = arith.constant 0 : index
      %c0_30 = arith.constant 0 : index
      %54 = vector.load %arg4[%c0_28, %c0_29, %c0_30] : memref<1x24x128xf32, #tpu.memory_space<vmem>>, vector<1x24x128xf32>
      %55 = vector.shape_cast %54 : vector<1x24x128xf32> to vector<24x128xf32>
      %56 = vector.shape_cast %53 : vector<24x128xf32> to vector<1x24x128xf32>
      tpu.vector_store %arg4[%c0_28, %c0_29, %c0_30], %56 {strides = array<i32>} : memref<1x24x128xf32, #tpu.memory_space<vmem>>, vector<1x24x128xf32>,
    } else {
    }
    %c1_i32 = arith.constant 1 : i32
    %3 = arith.muli %arg0, %c1_i32 : i32
    %4 = arith.addi %3, %arg1 : i32
    %c0 = arith.constant 0 : index
    %c0_1 = arith.constant 0 : index
    %5 = vector.load %arg2[%c0, %c0_1] : memref<16x128xf32, #tpu.memory_space<vmem>>, vector<16x128xf32>
    %c0_2 = arith.constant 0 : index
    %c0_3 = arith.constant 0 : index
    %6 = vector.load %arg3[%c0_2, %c0_3] : memref<16x128xf32, #tpu.memory_space<vmem>>, vector<16x128xf32>
    %cst = arith.constant 5.000000e-01 : f32
    %7 = vector.broadcast %cst : f32 to vector<16x128xf32>
    %8 = arith.mulf %7, %5 : vector<16x128xf32>
    %9 = math.tanh %8 : vector<16x128xf32>
    %cst_4 = arith.constant 5.000000e-01 : f32
    %10 = vector.broadcast %cst_4 : f32 to vector<16x128xf32>
    %11 = arith.mulf %10, %9 : vector<16x128xf32>
    %cst_5 = arith.constant 5.000000e-01 : f32
    %12 = vector.broadcast %cst_5 : f32 to vector<16x128xf32>
    %13 = arith.addf %11, %12 : vector<16x128xf32>
    %14 = tpu.iota {dimensions = array<i32: 0>} : vector<16x128xi32>
    %15 = tpu.iota {dimensions = array<i32: 1>} : vector<16x128xi32>
    %c16_i32 = arith.constant 16 : i32
    %16 = arith.muli %4, %c16_i32 : i32
    %17 = vector.broadcast %16 : i32 to vector<16x128xi32>
    %18 = arith.addi %17, %14 : vector<16x128xi32>
    %c128_i32 = arith.constant 128 : i32
    %19 = vector.broadcast %c128_i32 : i32 to vector<16x128xi32>
    %20 = arith.muli %18, %19 : vector<16x128xi32>
    %21 = arith.addi %20, %15 : vector<16x128xi32>
    %c2048_i32 = arith.constant 2048 : i32
    %22 = vector.broadcast %c2048_i32 : i32 to vector<16x128xi32>
    %23 = arith.cmpi slt, %21, %22 : vector<16x128xi32>
    %cst_6 = arith.constant 0.000000e+00 : f32
    %24 = vector.broadcast %cst_6 : f32 to vector<16x128xf32>
    %25 = arith.select %23, %13, %24 : vector<16x128xi1>, vector<16x128xf32>
    %cst_7 = arith.constant 0.000000e+00 : f32
    %26 = vector.broadcast %cst_7 : f32 to vector<16x128xf32>
    %27 = arith.select %23, %6, %26 : vector<16x128xi1>, vector<16x128xf32>
    %c0_8 = arith.constant 0 : index
    %c0_9 = arith.constant 0 : index
    %c0_10 = arith.constant 0 : index
    %28 = vector.load %arg4[%c0_8, %c0_9, %c0_10] : memref<1x24x128xf32, #tpu.memory_space<vmem>>, vector<1x8x128xf32>
    %29 = vector.shape_cast %28 : vector<1x8x128xf32> to vector<8x128xf32>
    %30 = arith.mulf %25, %27 : vector<16x128xf32>
    %31 = vector.shape_cast %30 : vector<16x128xf32> to vector<2x8x128xf32>
    %cst_11 = arith.constant dense<0.000000e+00> : vector<8x128xf32>
    %32 = vector.multi_reduction <add>, %31, %cst_11 [0] : vector<2x8x128xf32> to vector<8x128xf32>
    %33 = arith.addf %29, %32 : vector<8x128xf32>
    %c0_12 = arith.constant 0 : index
    %c0_13 = arith.constant 0 : index
    %c0_14 = arith.constant 0 : index
    %34 = vector.load %arg4[%c0_12, %c0_13, %c0_14] : memref<1x24x128xf32, #tpu.memory_space<vmem>>, vector<1x8x128xf32>
    %35 = vector.shape_cast %34 : vector<1x8x128xf32> to vector<8x128xf32>
    %36 = vector.shape_cast %33 : vector<8x128xf32> to vector<1x8x128xf32>
    tpu.vector_store %arg4[%c0_12, %c0_13, %c0_14], %36 {strides = array<i32>} : memref<1x24x128xf32, #tpu.memory_space<vmem>>, vector<1x8x128xf32>,
    %c0_15 = arith.constant 0 : index
    %c8 = arith.constant 8 : index
    %c0_16 = arith.constant 0 : index
    %37 = vector.load %arg4[%c0_15, %c8, %c0_16] : memref<1x24x128xf32, #tpu.memory_space<vmem>>, vector<1x8x128xf32>
    %38 = vector.shape_cast %37 : vector<1x8x128xf32> to vector<8x128xf32>
    %39 = vector.shape_cast %25 : vector<16x128xf32> to vector<2x8x128xf32>
    %cst_17 = arith.constant dense<0.000000e+00> : vector<8x128xf32>
    %40 = vector.multi_reduction <add>, %39, %cst_17 [0] : vector<2x8x128xf32> to vector<8x128xf32>
    %41 = arith.addf %38, %40 : vector<8x128xf32>
    %c0_18 = arith.constant 0 : index
    %c8_19 = arith.constant 8 : index
    %c0_20 = arith.constant 0 : index
    %42 = vector.load %arg4[%c0_18, %c8_19, %c0_20] : memref<1x24x128xf32, #tpu.memory_space<vmem>>, vector<1x8x128xf32>
    %43 = vector.shape_cast %42 : vector<1x8x128xf32> to vector<8x128xf32>
    %44 = vector.shape_cast %41 : vector<8x128xf32> to vector<1x8x128xf32>
    tpu.vector_store %arg4[%c0_18, %c8_19, %c0_20], %44 {strides = array<i32>} : memref<1x24x128xf32, #tpu.memory_space<vmem>>, vector<1x8x128xf32>,
    %c0_21 = arith.constant 0 : index
    %c16 = arith.constant 16 : index
    %c0_22 = arith.constant 0 : index
    %45 = vector.load %arg4[%c0_21, %c16, %c0_22] : memref<1x24x128xf32, #tpu.memory_space<vmem>>, vector<1x8x128xf32>
    %46 = vector.shape_cast %45 : vector<1x8x128xf32> to vector<8x128xf32>
    %47 = vector.shape_cast %27 : vector<16x128xf32> to vector<2x8x128xf32>
    %cst_23 = arith.constant dense<0.000000e+00> : vector<8x128xf32>
    %48 = vector.multi_reduction <add>, %47, %cst_23 [0] : vector<2x8x128xf32> to vector<8x128xf32>
    %49 = arith.addf %46, %48 : vector<8x128xf32>
    %c0_24 = arith.constant 0 : index
    %c16_25 = arith.constant 16 : index
    %c0_26 = arith.constant 0 : index
    %50 = vector.load %arg4[%c0_24, %c16_25, %c0_26] : memref<1x24x128xf32, #tpu.memory_space<vmem>>, vector<1x8x128xf32>
    %51 = vector.shape_cast %50 : vector<1x8x128xf32> to vector<8x128xf32>
    %52 = vector.shape_cast %49 : vector<8x128xf32> to vector<1x8x128xf32>
    tpu.vector_store %arg4[%c0_24, %c16_25, %c0_26], %52 {strides = array<i32>} : memref<1x24x128xf32, #tpu.memory_space<vmem>>, vector<1x8x128xf32>,
    return
  }
  func.func @transform_0(%arg0: i32, %arg1: i32) -> (i32, i32) {
    %c1_i32 = arith.constant 1 : i32
    %0 = arith.muli %arg0, %c1_i32 : i32
    %1 = arith.addi %0, %arg1 : i32
    %c0_i32 = arith.constant 0 : i32
    %2 = arith.minsi %1, %c0_i32 : i32
    %c0_i32_0 = arith.constant 0 : i32
    %c0_i32_1 = arith.constant 0 : i32
    return %2, %c0_i32_0 : i32, i32
  }
  func.func @transform_1(%arg0: i32, %arg1: i32) -> (i32, i32) {
    %c1_i32 = arith.constant 1 : i32
    %0 = arith.muli %arg0, %c1_i32 : i32
    %1 = arith.addi %0, %arg1 : i32
    %c0_i32 = arith.constant 0 : i32
    %2 = arith.minsi %1, %c0_i32 : i32
    %c0_i32_0 = arith.constant 0 : i32
    %c0_i32_1 = arith.constant 0 : i32
    return %2, %c0_i32_0 : i32, i32
  }
  func.func @transform_2(%arg0: i32, %arg1: i32) -> (i32, i32, i32) {
    %c0_i32 = arith.constant 0 : i32
    %c0_i32_0 = arith.constant 0 : i32
    %c0_i32_1 = arith.constant 0 : i32
    return %arg0, %c0_i32, %c0_i32_0 : i32, i32, i32
  }
}

</mosaic_0001>

<bundles_post_ra>
// kernel: tpu_custom_call.1
= control target key start
LH: loop header
LB: loop body
LE: loop exit
PB: predicated region body
PF: predicated region fallthrough
CT: control target
= control target key end

     0   :  { %7 = vsyncpa [#allocation3], 0  ;;  %s915_s0 = inlined_call_operand.hbm [shape: f32[16,128], index: 0, kind: input, shape index: {}]   ;;  %s916_s1 = inlined_call_operand.hbm [shape: f32[16,128], index: 1, kind: input, shape index: {}]   ;;  %s917_s2 = inlined_call_operand.hbm [shape: f32[2,24,128], index: 2, kind: output, shape index: {}]  }
   0x1   :  { %9 = vsyncpa [#allocation3 + $0x1], 0 }
   0x2   :  { %10 = vsyncpa [#allocation6], 0 }
   0x3   :  { %12 = vsyncpa [#allocation6 + $0x1], 0 }
   0x4   :  { %13 = vsyncpa [#allocation4], 0 }
   0x5   :  { %15 = vsyncpa [#allocation4 + $0x1], 0  ;;  %s717_s9 = smov 0   ;;  %s719_s10 = smov 0  }
   0x6   :  { %s721_s11 = smov 0   ;;  %s723_s12 = smov 0  }
   0x7   :  { %s725_s13 = smov 0   ;;  %s727_s14 = smov 0  }
   0x8   :  { %s729_s15 = smov 0   ;;  %s731_s16 = smov 0  }
   0x9 LB: > { %s411_s17 = sadd.s32 4294967295, %s693_s16   ;;  %s412_s18 = sadd.s32 4294967294, %s693_s16   ;;  %s693_s16 = sphi %s731_s16, %s21_s16   ;;  %s689_s15 = sphi %s729_s15, %s936_s15   ;;  %s685_s14 = sphi %s727_s14, %s935_s14   ;;  %s681_s13 = sphi %s725_s13, %s905_s13   ;;  %s677_s12 = sphi %s723_s12, %s934_s12   ;;  %s673_s11 = sphi %s721_s11, %s933_s11   ;;  %s669_s10 = sphi %s719_s10, %s932_s10   ;;  %s665_s9 = sphi %s717_s9, %s931_s9  }
   0xa   : > { %s33_s19 = sadd.s32 1, %s689_s15  ;;  %p662_p1 = scmp.ne.s32.totalorder %s681_s13, 0 }
   0xb   : > { %p35_p0 = scmp.ge.s32.totalorder %s33_s19, 2  ;;  %p54_p2 = scmp.eq.s32.totalorder %s693_s16, 0 }
   0xc   : > { %p59_p3 = scmp.ne.s32.totalorder %s681_s13, %s677_s12  ;;  %p60_p5 = scmp.eq.s32.totalorder %s411_s17, 0 }
   0xd   : > { %s938_s19 = smov (%p35_p0, %s33_s19), 0  ;;  %p763_p4 = por %p662_p1, %p54_p2 }
   0xe   : > { %p767_p6 = por %p60_p5, %p59_p3  ;;  %s101_s22 = ssub.s32 %s689_s15, %s938_s19 }
   0xf   : > { %p102_p7 = scmp.eq.s32.totalorder %s101_s22, 0  ;;  %s104_s23 = sadd.s32 1, %s673_s11 }
  0x10   : > { %s921_s21 = scalar_select %p767_p6, 1, 0 }
  0x11   : > { %s775_s24 = scalar_select %p102_p7, %s673_s11, %s104_s23  }
  0x12   : > { %p114_p8 = scmp.ne.s32.totalorder %s673_s11, %s669_s10  ;;  %p115_p9 = scmp.eq.s32.totalorder %s411_s17, 1 }
  0x13   : > { %p120_p10 = scmp.ne.s32.totalorder %s669_s10, %s665_s9  ;;  %p121_p11 = scmp.eq.s32.totalorder %s412_s18, 1 }
  0x14   : > { %p781_p12 = por %p115_p9, %p114_p8  ;;  %p449_p1 = scmp.lt.s32.totalorder %s693_s16, 2 }
  0x15   : > { %p786_p0 = por %p121_p11, %p120_p10  ;;  %s695_s27 = smov [#allocation2]  }
  0x16   : > { %s922_s25 = scalar_select %p781_p12, 1, 0 }
  0x17   : > { %s923_s26 = scalar_select %p786_p0, 1, 0 }
  0x18   : > { %s155_s28 = sshll.u32 %s695_s27, 4  ;;  %p793_p2 = pnand %p449_p1, %p763_p4  ;;  %s156_s28 = int_to_ptr.vmem [resolvable:$true] %s155_s28 }
  0x19   : > { %s532_s4 = scalar_lea.hbm %s915_s0, 256 }
  0x1a   : > { %p533_p3 = scmp.ne.s32.totalorder %s915_s0, %s532_s4  ;;  %p534_p5 = pneg %p793_p2 }
  0x1b   : > { %p539_p8 = scmp.lt.s32.totalorder %s532_s4, %s532_s4 }
  0x1c   : > { %p535_p7 = pnand %p534_p5, %p533_p3 }
  0x1e   : > { %p536_p4 = pneg %p535_p7 }
  0x20   : > { %p541_p9 = pnand %p539_p8, %p536_p4 }
  0x22   : > { %544 = shalt.err (!%p541_p9)
}
  0x23   : > { %s545_s7 = scalar_lea.vmem %s156_s28, 256  ;;  %s552_s8 = scalar_lea.vmem %s156_s28, 512 }
  0x24   : > { %p546_p10 = scmp.ne.s32.totalorder %s156_s28, %s545_s7  ;;  %p553_p13 = scmp.lt.s32.totalorder %s156_s28, %s156_s28 }
  0x25   : > { %p554_p0 = scmp.lt.s32.totalorder %s552_s8, %s545_s7 }
  0x26   : > { %p548_p11 = pnand %p546_p10, %p534_p5 }
  0x27   : > { %p555_p12 = por %p554_p0, %p553_p13 }
  0x28   : > { %p549_p1 = pneg %p548_p11 }
  0x2a   : > { %p556_p6 = pnand %p555_p12, %p549_p1 }
  0x2c   : > { %559 = shalt.err (!%p556_p6)
}
  0x2d   : > { %s696_s12 = smov 128   ;;  %s697_s17 = smov 8  }
  0x2e   : > { %441 = dma.hbm_to_vmem [thread:$0]  (!%p793_p2), %s915_s0, 256, %s156_s28, [#allocation3], %s696_s12, %s696_s12, %s697_s17  }
  0x2f   : > { %p421_p3 = scmp.ge.s32.totalorder %s693_s16, 1  ;;  %p187_p7 = scmp.lt.s32.totalorder %s693_s16, 3 }
  0x30   : > { %s698_s23 = smov [#allocation5]   ;;  %s560_s4 = scalar_lea.hbm %s916_s1, 256 }
  0x31   : > { %p818_p4 = pnand %p421_p3, %p187_p7  ;;  %s179_s27 = sshll.u32 %s698_s23, 4  ;;  %s180_s27 = int_to_ptr.vmem [resolvable:$true] %s179_s27 }
  0x32   : > { %p561_p6 = scmp.ne.s32.totalorder %s916_s1, %s560_s4  ;;  %p567_p0 = scmp.lt.s32.totalorder %s560_s4, %s560_s4 }
  0x33   : > { %s925_s22 = scalar_select %p818_p4, 1, 0 }
  0x34   : > { %p563_p12 = pnand %p561_p6, %p534_p5 }
  0x36   : > { %p564_p13 = pneg %p563_p12 }
  0x38   : > { %p569_p8 = pnand %p567_p0, %p564_p13 }
  0x3a   : > { %572 = shalt.err (!%p569_p8)
}
  0x3b   : > { %s573_s28 = scalar_lea.vmem %s180_s27, 256  ;;  %s580_s7 = scalar_lea.vmem %s180_s27, 512 }
  0x3c   : > { %p574_p9 = scmp.ne.s32.totalorder %s180_s27, %s573_s28  ;;  %p581_p1 = scmp.lt.s32.totalorder %s180_s27, %s180_s27 }
  0x3d   : > { %p582_p3 = scmp.lt.s32.totalorder %s580_s7, %s573_s28 }
  0x3e   : > { %p576_p10 = pnand %p574_p9, %p534_p5 }
  0x3f   : > { %p583_p7 = por %p582_p3, %p581_p1 }
  0x40   : > { %p577_p11 = pneg %p576_p10 }
  0x42   : > { %p584_p4 = pnand %p583_p7, %p577_p11 }
  0x44   : > { %587 = shalt.err (!%p584_p4)
}
  0x45   : > { %444 = dma.hbm_to_vmem [thread:$0]  (!%p793_p2), %s916_s1, 256, %s180_s27, [#allocation6], %s696_s12, %s696_s12, %s697_s17  }
  0x46   : > { %p926_p6 = scmp.ne.s32.totalorder %s925_s22, 0 }
  0x47   : > { %s193_s20 = sand.u32 (!%p926_p6), 1, %s681_s13   ;;  %p927_p5 = scmp.ne.s32.totalorder (!%p926_p6), %s921_s21, 0 }
  0x48   : > { %191 = sbr.rel (%p926_p6) target bundleno = 121 (0x79), region = 28  ;;  %s422_s23 = sshll.u32 (!%p926_p6), %s193_s20, 4 }
  0x49   : > { %s194_s30 = scalar_lea.sflag (!%p926_p6), [#allocation3], %s193_s20  ;;  %s197_s3 = scalar_lea.vmem (!%p926_p6), [#allocation2], %s422_s23 }
  0x4d   : > { %651 = dma.done.wait (%p927_p5), %s194_s30, 256  }
  0x4e   : > { %653 = vsyncadd (%p927_p5), %s194_s30, 4294967040  ;;  %s203_s29 = scalar_lea.sflag [#allocation6], %s193_s20  ;;  %s206_s4 = scalar_lea.vmem [#allocation5], %s422_s23 }
  0x4f   : > { %655 = dma.done.wait (%p927_p5), %s203_s29, 256  }
  0x50   : > { %657 = vsyncadd (%p927_p5), %s203_s29, 4294967040  ;;  %v260_v0 = vlaneseq  ;;  %s424_s12 = sshll.u32 %s685_s14, 4  ;;  %v248_v8 = vld [vmem:[%s197_s3] sm:$0xff]  ;;  %v249_v9 = vld [vmem:[%s197_s3 + $0x8] sm:$0xff]  ;;  %s229_s17 = sand.u32 1, %s669_s10  }
  0x51   : > { %v266_v1 = vstv %s424_s12  ;;  %v252_v10 = vmul.f32 0.5, %v248_v8  ;;  %v253_v11 = vmul.f32 0.5, %v249_v9  ;;  %v250_v14 = vld [vmem:[%s206_s4] sm:$0xff]  ;;  %v251_v15 = vld [vmem:[%s206_s4 + $0x8] sm:$0xff]  ;;  %s430_s21 = smul.u32 24, %s229_s17  ;;  %s864_s8 = scalar_lea.sflag [#allocation4], %s229_s17 }
  0x52   : > { %v261_v2 = vshrl.u32 %v260_v0, 7  ;;  %v264_v4 = vand.u32 127, %v260_v0  ;;  %s431_s27 = smul.u32 384, %s685_s14  ;;  %p928_p4 = scmp.ne.s32.totalorder %s922_s25, 0 }
  0x53   : > { %528 = vtanh.f32 %v252_v10  ;;  %s231_s22 = scalar_lea.vmem [#allocation7], %s430_s21  ;;  %s699_s14 = smov [#allocation7]  }
  0x54   : > { %v262_v3 = vadd.s32 8, %v261_v2  ;;  %v267_v5 = vadd.s32 %v266_v1, %v261_v2  ;;  %530 = vtanh.f32 %v253_v11  ;;  %s307_s5 = sshll.u32 %s231_s22, 4  ;;  %s858_s7 = scalar_lea.hbm %s917_s2, %s431_s27  ;;  %s860_s5 = int_to_ptr.vmem [resolvable:$true] %s307_s5 }
  0x55   : > { %s588_s18 = scalar_lea.vmem %s860_s5, 384  ;;  %s592_s20 = sshll.u32 %s699_s14, 4  ;;  %s593_s20 = int_to_ptr.vmem [resolvable:$false] %s592_s20 }
  0x56   : > { %v268_v6 = vadd.s32 %v266_v1, %v262_v3  ;;  %v269_v7 = vmul.u32 128, %v267_v5  ;;  %p589_p2 = scmp.ne.s32.totalorder %s860_s5, %s588_s18  ;;  %s594_s23 = scalar_lea.vmem %s593_s20, 768 }
  0x57   : > { %p595_p0 = scmp.lt.s32.totalorder %s860_s5, %s593_s20  ;;  %p596_p8 = scmp.lt.s32.totalorder %s594_s23, %s588_s18 }
  0x58   : > { %v270_v12 = vmul.u32 128, %v268_v6  ;;  %v271_v13 = vadd.s32 %v269_v7, %v264_v4  ;;  %p590_p12 = pnand %p589_p2, %p928_p4 }
  0x59   : > { %p597_p9 = por %p596_p8, %p595_p0 }
  0x5a   : > { %v272_v16 = vadd.s32 %v270_v12, %v264_v4  ;;  %vm273_vm0 = vcmp.lt.s32.totalorder %v271_v13, 2048  ;;  %p591_p13 = pneg %p590_p12 }
  0x5b   : > { %v277_v17 = vsel %vm273_vm0, %v250_v14, 0.0 }
  0x5c   : > { %vm274_vm1 = vcmp.lt.s32.totalorder %v272_v16, 2048  ;;  %p598_p10 = pnand %p597_p9, %p591_p13 }
  0x5d   : > { %v278_v18 = vsel %vm274_vm1, %v251_v15, 0.0 }
  0x5e   : > { %v290_v19 = vadd.f32 %v278_v18, %v277_v17 }
  0x60   : > { %292 = vst [vmem:[%s231_s22 + $0x10] sm:$0xff] %v290_v19  ;;  %v529_v20 = vpop.eup %528 }
  0x61   : > { %v531_v21 = vpop.eup %530  ;;  %v256_v22 = vmul.f32 0.5, %v529_v20 }
  0x62   : > { %v257_v23 = vmul.f32 0.5, %v531_v21 }
  0x63   : > { %v258_v24 = vadd.f32 0.5, %v256_v22 }
  0x64   : > { %v259_v25 = vadd.f32 0.5, %v257_v23 }
  0x65   : > { %v275_v26 = vsel %vm273_vm0, %v258_v24, 0.0 }
  0x66   : > { %v276_v27 = vsel %vm274_vm1, %v259_v25, 0.0  ;;  %v280_v28 = vmul.f32 %v277_v17, %v275_v26 }
  0x67   : > { %v281_v29 = vmul.f32 %v278_v18, %v276_v27  ;;  %v286_v30 = vadd.f32 %v276_v27, %v275_v26 }
  0x69   : > { %v282_v31 = vadd.f32 %v281_v29, %v280_v28  ;;  %288 = vst [vmem:[%s231_s22 + $0x8] sm:$0xff] %v286_v30 }
  0x6b   : > { %284 = vst [vmem:[%s231_s22] sm:$0xff] %v282_v31 }
  0x6c   : > { %601 = shalt.err (!%p598_p10)
}
  0x6d   : > { %s602_s30 = scalar_lea.hbm %s858_s7, 384  ;;  %s606_s4 = scalar_lea.hbm %s917_s2, 768 }
  0x6e   : > { %p603_p11 = scmp.ne.s32.totalorder %s858_s7, %s602_s30  ;;  %p607_p7 = scmp.lt.s32.totalorder %s858_s7, %s917_s2 }
  0x6f   : > { %p608_p6 = scmp.lt.s32.totalorder %s606_s4, %s602_s30 }
  0x70   : > { %p604_p1 = pnand %p603_p11, %p928_p4 }
  0x71   : > { %p609_p5 = por %p608_p6, %p607_p7 }
  0x72   : > { %p605_p3 = pneg %p604_p1 }
  0x74   : > { %p610_p2 = pnand %p609_p5, %p605_p3 }
  0x76   : > { %613 = shalt.err (!%p610_p2)
}
  0x77   : > { %s700_s21 = smov 128   ;;  %s701_s22 = smov 8  }
  0x78   : > { %436 = dma.vmem_to_hbm [thread:$0]  (%p928_p4), %s860_s5, 384, %s858_s7, %s864_s8, %s700_s21, %s700_s21, %s701_s22  }
  0x79 PF: > { %s322_s27 = sand.u32 1, %s665_s9   ;;  %p929_p12 = scmp.ne.s32.totalorder %s923_s26, 0 }
  0x7a   : > { %p930_p13 = scmp.ge.s32.totalorder %s693_s16, 2  ;;  %s323_s6 = scalar_lea.sflag [#allocation4], %s322_s27 }
  0x7c   : > { %p446_p0 = pnand %p930_p13, %p929_p12 }
  0x7e   : > { %p447_p8 = pneg %p446_p0 }
  0x80   : > { %659 = dma.done.wait (%p447_p8), %s323_s6, 384  }
  0x81   : > { %661 = vsyncadd (%p447_p8), %s323_s6, 4294966912  ;;  %s21_s16 = sadd.s32 1, %s693_s16   ;;  %s931_s9 = smov %s669_s10 }
  0x82   : > { %p18_p9 = scmp.ge.s32.totalorder %s21_s16, 4   ;;  %s932_s10 = smov %s673_s11 }
  0x83   : > { %s933_s11 = smov %s775_s24  ;;  %s934_s12 = smov %s681_s13 }
  0x84   : > { %s905_s13 = smov 0   ;;  %s935_s14 = smov %s689_s15 }
  0x85   : > { %s936_s15 = smov %s938_s19  ;;  %20 = sbr.rel (!%p18_p9) target bundleno = 9 (0x9), region = 90 }
  0x8a   :  { %328 = vsyncpa [#allocation3], 1 }
  0x8b   :  { %330 = vsyncpa [#allocation3 + $0x1], 1 }
  0x8c   :  { %331 = vsyncpa [#allocation6], 1 }
  0x8d   :  { %333 = vsyncpa [#allocation6 + $0x1], 1 }
  0x8e   :  { %334 = vsyncpa [#allocation4], 1 }
  0x8f   :  { %336 = vsyncpa [#allocation4 + $0x1], 1 }

</bundles_post_ra>
